<compile_context>
chip_gen: v6e
topology: v6e:2x2x1
jax: 0.10.0
libtpu: 0.0.40
codegen_flags: <defaults>
</compile_context>

<pallas_src>
import functools

import jax
import jax.numpy as jnp
from jax.experimental import pallas as pl
from jax.experimental.pallas import tpu as pltpu

F32 = jnp.float32
BF16 = jnp.bfloat16
LN_EPS = 1e-12


# ----------------------------------------------------------------------------
# In-kernel helpers
# ----------------------------------------------------------------------------
def _mm(a, b):
    """MXU matmul with bf16 operands and f32 accumulation."""
    return jnp.dot(a.astype(BF16), b.astype(BF16), preferred_element_type=F32)


def _ln(h, g, b, eps):
    """LayerNorm over the last axis, all math in f32."""
    mu = jnp.mean(h, axis=-1, keepdims=True)
    var = jnp.mean((h - mu) ** 2, axis=-1, keepdims=True)
    return (h - mu) * jax.lax.rsqrt(var + eps) * g + b


# ----------------------------------------------------------------------------
# Pallas kernels
# ----------------------------------------------------------------------------
def _ln_kernel(x_ref, g_ref, b_ref, o_ref, *, eps):
    o_ref[...] = _ln(x_ref[...].astype(F32), g_ref[...], b_ref[...],
                     eps).astype(o_ref.dtype)


def _layer_kernel(x_ref, mask_ref, wqkv_ref, bqkv_ref, wo_ref,
                  w1_ref, b1_ref, w2_ref, ph_ref, o_ref,
                  *, n_heads, head_dim, scale, eps):
    """One fully fused BERT encoder layer for one batch element.

    x_ref   : [1, S, H]  bf16   hidden states
    mask_ref: [1, 1, S]  f32    attention mask (1 keep / 0 masked)
    wqkv    : [H, 3H] bf16, bqkv: [1, 3H] f32
    wo      : [H, H]  bf16
    w1      : [H, F]  bf16, b1  : [1, F]  f32
    w2      : [F, H]  bf16
    ph      : [6, H]  f32   rows = (bo, ln1_g, ln1_b, b2, ln2_g, ln2_b)
    o_ref   : [1, S, H]  bf16
    """
    H = n_heads * head_dim
    x = x_ref[0].astype(F32)                       # [S, H] f32
    S = x.shape[0]

    ph = ph_ref[...]                               # [6, H]
    bo, ln1_g, ln1_b = ph[0:1], ph[1:2], ph[2:3]
    b2, ln2_g, ln2_b = ph[3:4], ph[4:5], ph[5:6]

    # Additive attention-mask bias built in-kernel: 0 keep / -1e9 masked,
    # broadcast over the query axis.
    bias = (mask_ref[0] - 1.0) * 1e9               # [1, S]

    # ---- fused QKV projection: one [S, 3H] MXU matmul, one bf16 cast -------
    qkv = (_mm(x, wqkv_ref[...]) + bqkv_ref[...]).astype(BF16)   # [S, 3H]
    q = qkv[:, 0 * H:1 * H].reshape(S, n_heads, head_dim)
    k = qkv[:, 1 * H:2 * H].reshape(S, n_heads, head_dim)
    v = qkv[:, 2 * H:3 * H].reshape(S, n_heads, head_dim)

    # ---- all heads in one batched dot_general -------------------------------
    s = jnp.einsum('qhd,khd->hqk', q, k,
                   preferred_element_type=F32) * scale + bias    # [nH, S, S]
    m = jnp.max(s, axis=-1, keepdims=True)
    p = jnp.exp(s - m)
    p = p * pl.reciprocal(jnp.sum(p, axis=-1, keepdims=True), approx=True)
    ctx = jnp.einsum('hqk,khd->qhd', p.astype(BF16), v,
                     preferred_element_type=F32).reshape(S, H)   # lane-dense

    # ---- output projection + residual + LayerNorm ---------------------------
    h1 = _ln(_mm(ctx, wo_ref[...]) + bo + x, ln1_g, ln1_b, eps)

    # ---- FFN (w1 + GELU + w2) + residual + LayerNorm ------------------------
    # TODO(synk): exact erf GELU in HF BERT; tanh approximation used here.
    ff = jax.nn.gelu(_mm(h1, w1_ref[...]) + b1_ref[...], approximate=True)
    y = _mm(ff, w2_ref[...]) + b2 + h1
    o_ref[0] = _ln(y, ln2_g, ln2_b, eps).astype(o_ref.dtype)


def _pool_heads_kernel(cls_ref, pw_ref, pb_ref, hw_ref, hb_ref, o_ref):
    """pooled = tanh(cls @ pool_w + pool_b); out = pooled @ [fc_charge|fc_k]."""
    pooled = jnp.tanh(_mm(cls_ref[...], pw_ref[...]) + pb_ref[...])
    o_ref[...] = _mm(pooled, hw_ref[...]) + hb_ref[...]


# ----------------------------------------------------------------------------
# Wrappers
# ----------------------------------------------------------------------------
def layernorm(x, g, b, out_dtype=BF16, eps=LN_EPS):
    M, H = x.shape
    return pl.pallas_call(
        functools.partial(_ln_kernel, eps=eps),
        out_shape=jax.ShapeDtypeStruct((M, H), out_dtype),
    )(x, g, b)


def fused_layer(x, mask, lp, n_heads, head_dim, eps=LN_EPS):
    """x: [B, S, H] bf16, mask: [B, 1, S] f32 -> [B, S, H] bf16."""
    B, S, H = x.shape
    F = lp["w1"].shape[1]
    scale = 1.0 / float(head_dim) ** 0.5
    flops = B * (2 * S * H * 3 * H            # qkv proj
                 + 4 * n_heads * S * S * head_dim  # attention matmuls
                 + 2 * S * H * H              # output proj
                 + 4 * S * H * F)             # ffn
    bytes_acc = (2 * B * S * H * 2            # x in + out (bf16)
                 + B * S * 4                  # mask
                 + 2 * (3 * H * H + H * H + 2 * H * F)   # bf16 weights
                 + 4 * (3 * H + F + 6 * H))   # small f32 params
    return pl.pallas_call(
        functools.partial(_layer_kernel, n_heads=n_heads, head_dim=head_dim,
                          scale=scale, eps=eps),
        grid=(B,),
        in_specs=[
            pl.BlockSpec((1, S, H), lambda b: (b, 0, 0)),      # x
            pl.BlockSpec((1, 1, S), lambda b: (b, 0, 0)),      # mask
            pl.BlockSpec((H, 3 * H), lambda b: (0, 0)),        # w_qkv
            pl.BlockSpec((1, 3 * H), lambda b: (0, 0)),        # b_qkv
            pl.BlockSpec((H, H), lambda b: (0, 0)),            # wo
            pl.BlockSpec((H, F), lambda b: (0, 0)),            # w1
            pl.BlockSpec((1, F), lambda b: (0, 0)),            # b1
            pl.BlockSpec((F, H), lambda b: (0, 0)),            # w2
            pl.BlockSpec((6, H), lambda b: (0, 0)),            # packed params
        ],
        out_specs=pl.BlockSpec((1, S, H), lambda b: (b, 0, 0)),
        out_shape=jax.ShapeDtypeStruct((B, S, H), BF16),
        compiler_params=pltpu.CompilerParams(
            dimension_semantics=("parallel",)),
        cost_estimate=pl.CostEstimate(flops=flops, transcendentals=B * S * F,
                                      bytes_accessed=bytes_acc),
        # For real bert-base shapes: also tile S/M, pick 256-multiple tiles
        # for the v6e/v7x MXU, and set vmem_limit_bytes (v7x VMEM = 64 MiB).
    )(x, mask, lp["w_qkv"], lp["b_qkv"], lp["wo"],
      lp["w1"], lp["b1"], lp["w2"], lp["p_h"])


def pool_and_heads(cls, pw, pb, hw, hb):
    B, H = cls.shape
    N = hw.shape[1]
    return pl.pallas_call(
        _pool_heads_kernel,
        out_shape=jax.ShapeDtypeStruct((B, N), F32),
    )(cls, pw, pb, hw, hb)


# ----------------------------------------------------------------------------
# Mini-BERT model (deterministic synthetic parameters)
# ----------------------------------------------------------------------------
CONFIG = dict(
    vocab_size=100,
    hidden=32,          # stands in for 768
    n_layers=2,
    n_heads=4,
    ffn_dim=64,
    max_pos=16,
    type_vocab=2,
    charge_class_num=10,
)


def init_params(key, cfg):
    H, F = cfg["hidden"], cfg["ffn_dim"]
    C = cfg["charge_class_num"]

    def nrm(k, shape, scale=0.02):
        return scale * jax.random.normal(k, shape, dtype=F32)

    keys = iter(jax.random.split(key, 64))
    p = {
        "word_emb": nrm(next(keys), (cfg["vocab_size"], H)),
        "pos_emb": nrm(next(keys), (cfg["max_pos"], H)),
        "type_emb": nrm(next(keys), (cfg["type_vocab"], H)),
        "emb_ln_g": jnp.ones((1, H), F32),
        "emb_ln_b": jnp.zeros((1, H), F32),
        "layers": [],
        "pool_w": nrm(next(keys), (H, H)).astype(BF16),
        "pool_b": jnp.zeros((1, H), F32),
        # fc_charge [H,C] and fc_k [H,1] fused into one lane-contiguous head.
        "head_w": jnp.concatenate(
            [nrm(next(keys), (H, C)), nrm(next(keys), (H, 1))],
            axis=1).astype(BF16),
        "head_b": jnp.zeros((1, C + 1), F32),
    }
    for _ in range(cfg["n_layers"]):
        wq = nrm(next(keys), (H, H))
        wk = nrm(next(keys), (H, H))
        wv = nrm(next(keys), (H, H))
        bo = jnp.zeros((H,), F32)
        ln1_g, ln1_b = jnp.ones((H,), F32), jnp.zeros((H,), F32)
        b2 = jnp.zeros((H,), F32)
        ln2_g, ln2_b = jnp.ones((H,), F32), jnp.zeros((H,), F32)
        p["layers"].append({
            "w_qkv": jnp.concatenate([wq, wk, wv], axis=1).astype(BF16),
            "b_qkv": jnp.zeros((1, 3 * H), F32),
            "wo": nrm(next(keys), (H, H)).astype(BF16),
            "w1": nrm(next(keys), (H, F)).astype(BF16),
            "b1": jnp.zeros((1, F), F32),
            "w2": nrm(next(keys), (F, H)).astype(BF16),
            # packed small params: (bo, ln1_g, ln1_b, b2, ln2_g, ln2_b)
            "p_h": jnp.stack([bo, ln1_g, ln1_b, b2, ln2_g, ln2_b], axis=0),
        })
    return p


def bert_forward(params, input_ids, token_type_ids, attention_mask, cfg):
    B, S = input_ids.shape
    H = cfg["hidden"]
    nH = cfg["n_heads"]
    Dh = H // nH

    # --- Embeddings (gather + sum stay in XLA; LN in-kernel) -----------------
    pos_ids = jnp.arange(S)
    emb = (jnp.take(params["word_emb"], input_ids, axis=0)
           + jnp.take(params["pos_emb"], pos_ids, axis=0)[None, :, :]
           + jnp.take(params["type_emb"], token_type_ids, axis=0))
    x = layernorm(emb.reshape(B * S, H),
                  params["emb_ln_g"], params["emb_ln_b"]).reshape(B, S, H)

    # Attention mask handed to the kernel as [B, 1, S]; the additive -1e9 bias
    # is built inside the kernel (no [B,S,S] materialization).
    mask = attention_mask.astype(F32).reshape(B, 1, S)

    # --- Transformer layers: ONE fused pallas_call per layer -----------------
    for lp in params["layers"]:
        x = fused_layer(x, mask, lp, nH, Dh)

    # --- Pooler + both heads fused (dropout in the module is unused) ---------
    cls = x[:, 0, :]                                             # [B, H] bf16
    logits = pool_and_heads(cls, params["pool_w"], params["pool_b"],
                            params["head_w"], params["head_b"])  # [B, C+1]
    C = cfg["charge_class_num"]
    return {"charge": logits[:, :C], "k": logits[:, C:C + 1]}


if __name__ == "__main__":
    cfg = CONFIG
    B, S = 2, 8

    key = jax.random.PRNGKey(0)
    k_ids, _ = jax.random.split(key)
    input_ids = jax.random.randint(k_ids, (B, S), 0, cfg["vocab_size"],
                                   dtype=jnp.int32)
    token_type_ids = jnp.zeros((B, S), dtype=jnp.int32)
    attention_mask = jnp.ones((B, S), dtype=jnp.int32)

    params = init_params(jax.random.PRNGKey(42), cfg)

    fwd = jax.jit(functools.partial(bert_forward, cfg=cfg))
    out = fwd(params, input_ids, token_type_ids, attention_mask)
    jax.block_until_ready(out)

    assert out["charge"].shape == (B, cfg["charge_class_num"])
    assert out["k"].shape == (B, 1)
    assert bool(jnp.all(jnp.isfinite(out["charge"])))
    assert bool(jnp.all(jnp.isfinite(out["k"])))
    print("KERNEL_OK")
</pallas_src>

<mosaic_0001>
module attributes {stable_mosaic.version = 11 : i64} {
  func.func @_pool_heads_kernel(%arg0: memref<2x32xbf16, #tpu.memory_space<vmem>>, %arg1: memref<32x32xbf16, #tpu.memory_space<vmem>>, %arg2: memref<1x32xf32, #tpu.memory_space<vmem>>, %arg3: memref<32x11xbf16, #tpu.memory_space<vmem>>, %arg4: memref<1x11xf32, #tpu.memory_space<vmem>>, %arg5: memref<2x11xf32, #tpu.memory_space<vmem>>) attributes {dimension_semantics = [], scalar_prefetch = 0 : i64, scratch_operands = 0 : i64, tpu.core_type = #tpu.core_type<tc>} {
    %c0 = arith.constant 0 : index
    %c0_0 = arith.constant 0 : index
    %0 = vector.load %arg0[%c0, %c0_0] : memref<2x32xbf16, #tpu.memory_space<vmem>>, vector<2x32xbf16>
    %c0_1 = arith.constant 0 : index
    %c0_2 = arith.constant 0 : index
    %1 = vector.load %arg1[%c0_1, %c0_2] : memref<32x32xbf16, #tpu.memory_space<vmem>>, vector<32x32xbf16>
    %cst = arith.constant dense<0.000000e+00> : vector<2x32xf32>
    %2 = tpu.matmul %0, %1, %cst {dimension_numbers = #tpu.dot_dimension_numbers<[1], [0], [0], [1], [0, 0, 1, 1], [], []>} : vector<2x32xbf16>, vector<32x32xbf16>, vector<2x32xf32> -> vector<2x32xf32>
    %c0_3 = arith.constant 0 : index
    %c0_4 = arith.constant 0 : index
    %3 = vector.load %arg2[%c0_3, %c0_4] : memref<1x32xf32, #tpu.memory_space<vmem>>, vector<1x32xf32>
    %4 = vector.broadcast %3 : vector<1x32xf32> to vector<2x32xf32>
    %5 = arith.addf %2, %4 : vector<2x32xf32>
    %6 = math.tanh %5 : vector<2x32xf32>
    %c0_5 = arith.constant 0 : index
    %c0_6 = arith.constant 0 : index
    %7 = vector.load %arg3[%c0_5, %c0_6] : memref<32x11xbf16, #tpu.memory_space<vmem>>, vector<32x11xbf16>
    %8 = arith.truncf %6 : vector<2x32xf32> to vector<2x32xbf16>
    %cst_7 = arith.constant dense<0.000000e+00> : vector<2x11xf32>
    %9 = tpu.matmul %8, %7, %cst_7 {dimension_numbers = #tpu.dot_dimension_numbers<[1], [0], [0], [1], [0, 0, 1, 1], [], []>} : vector<2x32xbf16>, vector<32x11xbf16>, vector<2x11xf32> -> vector<2x11xf32>
    %c0_8 = arith.constant 0 : index
    %c0_9 = arith.constant 0 : index
    %10 = vector.load %arg4[%c0_8, %c0_9] : memref<1x11xf32, #tpu.memory_space<vmem>>, vector<1x11xf32>
    %11 = vector.broadcast %10 : vector<1x11xf32> to vector<2x11xf32>
    %12 = arith.addf %9, %11 : vector<2x11xf32>
    %c0_10 = arith.constant 0 : index
    %c0_11 = arith.constant 0 : index
    %13 = vector.load %arg5[%c0_10, %c0_11] : memref<2x11xf32, #tpu.memory_space<vmem>>, vector<2x11xf32>
    tpu.vector_store %arg5[%c0_10, %c0_11], %12 {strides = array<i32>} : memref<2x11xf32, #tpu.memory_space<vmem>>, vector<2x11xf32>,
    return
  }
}

module attributes {stable_mosaic.version = 11 : i64} {
  func.func @_ln_kernel(%arg0: memref<16x32xf32, #tpu.memory_space<vmem>>, %arg1: memref<1x32xf32, #tpu.memory_space<vmem>>, %arg2: memref<1x32xf32, #tpu.memory_space<vmem>>, %arg3: memref<16x32xbf16, #tpu.memory_space<vmem>>) attributes {dimension_semantics = [], scalar_prefetch = 0 : i64, scratch_operands = 0 : i64, tpu.core_type = #tpu.core_type<tc>} {
    %c0 = arith.constant 0 : index
    %c0_0 = arith.constant 0 : index
    %0 = vector.load %arg0[%c0, %c0_0] : memref<16x32xf32, #tpu.memory_space<vmem>>, vector<16x32xf32>
    %c0_1 = arith.constant 0 : index
    %c0_2 = arith.constant 0 : index
    %1 = vector.load %arg1[%c0_1, %c0_2] : memref<1x32xf32, #tpu.memory_space<vmem>>, vector<1x32xf32>
    %c0_3 = arith.constant 0 : index
    %c0_4 = arith.constant 0 : index
    %2 = vector.load %arg2[%c0_3, %c0_4] : memref<1x32xf32, #tpu.memory_space<vmem>>, vector<1x32xf32>
    %cst = arith.constant dense<0.000000e+00> : vector<16xf32>
    %3 = vector.multi_reduction <add>, %0, %cst [1] : vector<16x32xf32> to vector<16xf32>
    %4 = vector.shape_cast %3 : vector<16xf32> to vector<16x1xf32>
    %cst_5 = arith.constant 3.200000e+01 : f32
    %5 = vector.broadcast %cst_5 : f32 to vector<16x1xf32>
    %6 = arith.divf %4, %5 : vector<16x1xf32>
    %7 = vector.broadcast %6 : vector<16x1xf32> to vector<16x32xf32>
    %8 = arith.subf %0, %7 : vector<16x32xf32>
    %9 = arith.mulf %8, %8 : vector<16x32xf32>
    %cst_6 = arith.constant dense<0.000000e+00> : vector<16xf32>
    %10 = vector.multi_reduction <add>, %9, %cst_6 [1] : vector<16x32xf32> to vector<16xf32>
    %11 = vector.shape_cast %10 : vector<16xf32> to vector<16x1xf32>
    %cst_7 = arith.constant 3.200000e+01 : f32
    %12 = vector.broadcast %cst_7 : f32 to vector<16x1xf32>
    %13 = arith.divf %11, %12 : vector<16x1xf32>
    %14 = vector.broadcast %6 : vector<16x1xf32> to vector<16x32xf32>
    %15 = arith.subf %0, %14 : vector<16x32xf32>
    %cst_8 = arith.constant 9.99999996E-13 : f32
    %16 = vector.broadcast %cst_8 : f32 to vector<16x1xf32>
    %17 = arith.addf %13, %16 : vector<16x1xf32>
    %18 = math.rsqrt %17 : vector<16x1xf32>
    %19 = vector.broadcast %18 : vector<16x1xf32> to vector<16x32xf32>
    %20 = arith.mulf %15, %19 : vector<16x32xf32>
    %21 = vector.broadcast %1 : vector<1x32xf32> to vector<16x32xf32>
    %22 = arith.mulf %20, %21 : vector<16x32xf32>
    %23 = vector.broadcast %2 : vector<1x32xf32> to vector<16x32xf32>
    %24 = arith.addf %22, %23 : vector<16x32xf32>
    %25 = arith.truncf %24 : vector<16x32xf32> to vector<16x32xbf16>
    %c0_9 = arith.constant 0 : index
    %c0_10 = arith.constant 0 : index
    %26 = vector.load %arg3[%c0_9, %c0_10] : memref<16x32xbf16, #tpu.memory_space<vmem>>, vector<16x32xbf16>
    tpu.vector_store %arg3[%c0_9, %c0_10], %25 {strides = array<i32>} : memref<16x32xbf16, #tpu.memory_space<vmem>>, vector<16x32xbf16>,
    return
  }
}

module attributes {stable_mosaic.version = 11 : i64} {
  func.func @_layer_kernel(%arg0: i32, %arg1: memref<1x8x32xbf16, #tpu.memory_space<vmem>>, %arg2: memref<1x1x8xf32, #tpu.memory_space<vmem>>, %arg3: memref<32x96xbf16, #tpu.memory_space<vmem>>, %arg4: memref<1x96xf32, #tpu.memory_space<vmem>>, %arg5: memref<32x32xbf16, #tpu.memory_space<vmem>>, %arg6: memref<32x64xbf16, #tpu.memory_space<vmem>>, %arg7: memref<1x64xf32, #tpu.memory_space<vmem>>, %arg8: memref<64x32xbf16, #tpu.memory_space<vmem>>, %arg9: memref<6x32xf32, #tpu.memory_space<vmem>>, %arg10: memref<1x8x32xbf16, #tpu.memory_space<vmem>>) attributes {dimension_semantics = [#tpu.dimension_semantics<parallel>], iteration_bounds = array<i64: 2>, scalar_prefetch = 0 : i64, scratch_operands = 0 : i64, tpu.core_type = #tpu.core_type<tc>, window_params = [{transform_indices = @transform_0, window_bounds = array<i64: 1, 8, 32>}, {transform_indices = @transform_1, window_bounds = array<i64: 1, 1, 8>}, {pipeline_mode = #tpu.pipeline_mode<synchronous>, transform_indices = @transform_2, window_bounds = array<i64: 32, 96>}, {pipeline_mode = #tpu.pipeline_mode<synchronous>, transform_indices = @transform_3, window_bounds = array<i64: 1, 96>}, {pipeline_mode = #tpu.pipeline_mode<synchronous>, transform_indices = @transform_4, window_bounds = array<i64: 32, 32>}, {pipeline_mode = #tpu.pipeline_mode<synchronous>, transform_indices = @transform_5, window_bounds = array<i64: 32, 64>}, {pipeline_mode = #tpu.pipeline_mode<synchronous>, transform_indices = @transform_6, window_bounds = array<i64: 1, 64>}, {pipeline_mode = #tpu.pipeline_mode<synchronous>, transform_indices = @transform_7, window_bounds = array<i64: 64, 32>}, {pipeline_mode = #tpu.pipeline_mode<synchronous>, transform_indices = @transform_8, window_bounds = array<i64: 6, 32>}, {transform_indices = @transform_9, window_bounds = array<i64: 1, 8, 32>}]} {
    %c0 = arith.constant 0 : index
    %c0_0 = arith.constant 0 : index
    %c0_1 = arith.constant 0 : index
    %0 = vector.load %arg1[%c0, %c0_0, %c0_1] : memref<1x8x32xbf16, #tpu.memory_space<vmem>>, vector<1x8x32xbf16>
    %1 = vector.shape_cast %0 : vector<1x8x32xbf16> to vector<8x32xbf16>
    %2 = arith.extf %1 : vector<8x32xbf16> to vector<8x32xf32>
    %c0_2 = arith.constant 0 : index
    %c0_3 = arith.constant 0 : index
    %3 = vector.load %arg9[%c0_2, %c0_3] : memref<6x32xf32, #tpu.memory_space<vmem>>, vector<6x32xf32>
    %4 = vector.extract_strided_slice %3 {offsets = [0, 0], sizes = [1, 32], strides = [1, 1]} : vector<6x32xf32> to vector<1x32xf32>
    %5 = vector.extract_strided_slice %3 {offsets = [1, 0], sizes = [1, 32], strides = [1, 1]} : vector<6x32xf32> to vector<1x32xf32>
    %6 = vector.extract_strided_slice %3 {offsets = [2, 0], sizes = [1, 32], strides = [1, 1]} : vector<6x32xf32> to vector<1x32xf32>
    %7 = vector.extract_strided_slice %3 {offsets = [3, 0], sizes = [1, 32], strides = [1, 1]} : vector<6x32xf32> to vector<1x32xf32>
    %8 = vector.extract_strided_slice %3 {offsets = [4, 0], sizes = [1, 32], strides = [1, 1]} : vector<6x32xf32> to vector<1x32xf32>
    %9 = vector.extract_strided_slice %3 {offsets = [5, 0], sizes = [1, 32], strides = [1, 1]} : vector<6x32xf32> to vector<1x32xf32>
    %c0_4 = arith.constant 0 : index
    %c0_5 = arith.constant 0 : index
    %c0_6 = arith.constant 0 : index
    %10 = vector.load %arg2[%c0_4, %c0_5, %c0_6] : memref<1x1x8xf32, #tpu.memory_space<vmem>>, vector<1x1x8xf32>
    %11 = vector.shape_cast %10 : vector<1x1x8xf32> to vector<1x8xf32>
    %cst = arith.constant 1.000000e+00 : f32
    %12 = vector.broadcast %cst : f32 to vector<1x8xf32>
    %13 = arith.subf %11, %12 : vector<1x8xf32>
    %cst_7 = arith.constant 1.000000e+09 : f32
    %14 = vector.broadcast %cst_7 : f32 to vector<1x8xf32>
    %15 = arith.mulf %13, %14 : vector<1x8xf32>
    %c0_8 = arith.constant 0 : index
    %c0_9 = arith.constant 0 : index
    %16 = vector.load %arg3[%c0_8, %c0_9] : memref<32x96xbf16, #tpu.memory_space<vmem>>, vector<32x96xbf16>
    %17 = arith.truncf %2 : vector<8x32xf32> to vector<8x32xbf16>
    %cst_10 = arith.constant dense<0.000000e+00> : vector<8x96xf32>
    %18 = tpu.matmul %17, %16, %cst_10 {dimension_numbers = #tpu.dot_dimension_numbers<[1], [0], [0], [1], [0, 0, 1, 1], [], []>} : vector<8x32xbf16>, vector<32x96xbf16>, vector<8x96xf32> -> vector<8x96xf32>
    %c0_11 = arith.constant 0 : index
    %c0_12 = arith.constant 0 : index
    %19 = vector.load %arg4[%c0_11, %c0_12] : memref<1x96xf32, #tpu.memory_space<vmem>>, vector<1x96xf32>
    %20 = vector.broadcast %19 : vector<1x96xf32> to vector<8x96xf32>
    %21 = arith.addf %18, %20 : vector<8x96xf32>
    %22 = arith.truncf %21 : vector<8x96xf32> to vector<8x96xbf16>
    %23 = vector.extract_strided_slice %22 {offsets = [0, 0], sizes = [8, 32], strides = [1, 1]} : vector<8x96xbf16> to vector<8x32xbf16>
    %24 = vector.shape_cast %23 : vector<8x32xbf16> to vector<8x4x8xbf16>
    %25 = vector.extract_strided_slice %22 {offsets = [0, 32], sizes = [8, 32], strides = [1, 1]} : vector<8x96xbf16> to vector<8x32xbf16>
    %26 = vector.shape_cast %25 : vector<8x32xbf16> to vector<8x4x8xbf16>
    %27 = vector.extract_strided_slice %22 {offsets = [0, 64], sizes = [8, 32], strides = [1, 1]} : vector<8x96xbf16> to vector<8x32xbf16>
    %28 = vector.shape_cast %27 : vector<8x32xbf16> to vector<8x4x8xbf16>
    "tpu.trace_start"() <{level = 10 : i32, message = "qhd,khd->hqk"}> : () -> ()
    %cst_13 = arith.constant dense<0.000000e+00> : vector<4x8x8xf32>
    %29 = tpu.matmul %24, %26, %cst_13 {dimension_numbers = #tpu.dot_dimension_numbers<[2], [2], [0], [0], [0, 1, 0, 0, 1, 0], [1], [1]>} : vector<8x4x8xbf16>, vector<8x4x8xbf16>, vector<4x8x8xf32> -> vector<4x8x8xf32>
    "tpu.trace_stop"() : () -> ()
    %cst_14 = arith.constant 0.353553385 : f32
    %30 = vector.broadcast %cst_14 : f32 to vector<4x8x8xf32>
    %31 = arith.mulf %29, %30 : vector<4x8x8xf32>
    %32 = vector.shape_cast %15 : vector<1x8xf32> to vector<1x1x8xf32>
    %33 = vector.broadcast %32 : vector<1x1x8xf32> to vector<4x8x8xf32>
    %34 = arith.addf %31, %33 : vector<4x8x8xf32>
    %cst_15 = arith.constant dense<0xFF800000> : vector<4x8xf32>
    %35 = vector.multi_reduction <maximumf>, %34, %cst_15 [2] : vector<4x8x8xf32> to vector<4x8xf32>
    %36 = vector.shape_cast %35 : vector<4x8xf32> to vector<4x8x1xf32>
    %37 = vector.broadcast %36 : vector<4x8x1xf32> to vector<4x8x8xf32>
    %38 = arith.subf %34, %37 : vector<4x8x8xf32>
    %39 = math.exp %38 : vector<4x8x8xf32>
    %cst_16 = arith.constant dense<0.000000e+00> : vector<4x8xf32>
    %40 = vector.multi_reduction <add>, %39, %cst_16 [2] : vector<4x8x8xf32> to vector<4x8xf32>
    %41 = vector.shape_cast %40 : vector<4x8xf32> to vector<4x8x1xf32>
    %42 = tpu.reciprocal %41 {approx = true} : vector<4x8x1xf32> -> vector<4x8x1xf32>
    %43 = vector.broadcast %42 : vector<4x8x1xf32> to vector<4x8x8xf32>
    %44 = arith.mulf %39, %43 : vector<4x8x8xf32>
    %45 = arith.truncf %44 : vector<4x8x8xf32> to vector<4x8x8xbf16>
    "tpu.trace_start"() <{level = 10 : i32, message = "hqk,khd->qhd"}> : () -> ()
    %cst_17 = arith.constant dense<0.000000e+00> : vector<4x8x8xf32>
    %46 = tpu.matmul %28, %45, %cst_17 {dimension_numbers = #tpu.dot_dimension_numbers<[0], [2], [2], [1], [0, 1, 0, 2, 1, 1], [1], [0]>} : vector<8x4x8xbf16>, vector<4x8x8xbf16>, vector<4x8x8xf32> -> vector<4x8x8xf32>
    %47 = tpu.transpose %46, [2, 0, 1] : vector<4x8x8xf32> -> vector<8x4x8xf32>
    "tpu.trace_stop"() : () -> ()
    %48 = vector.shape_cast %47 : vector<8x4x8xf32> to vector<8x32xf32>
    %c0_18 = arith.constant 0 : index
    %c0_19 = arith.constant 0 : index
    %49 = vector.load %arg5[%c0_18, %c0_19] : memref<32x32xbf16, #tpu.memory_space<vmem>>, vector<32x32xbf16>
    %50 = arith.truncf %48 : vector<8x32xf32> to vector<8x32xbf16>
    %cst_20 = arith.constant dense<0.000000e+00> : vector<8x32xf32>
    %51 = tpu.matmul %50, %49, %cst_20 {dimension_numbers = #tpu.dot_dimension_numbers<[1], [0], [0], [1], [0, 0, 1, 1], [], []>} : vector<8x32xbf16>, vector<32x32xbf16>, vector<8x32xf32> -> vector<8x32xf32>
    %52 = vector.broadcast %4 : vector<1x32xf32> to vector<8x32xf32>
    %53 = arith.addf %51, %52 : vector<8x32xf32>
    %54 = arith.addf %53, %2 : vector<8x32xf32>
    %cst_21 = arith.constant dense<0.000000e+00> : vector<8xf32>
    %55 = vector.multi_reduction <add>, %54, %cst_21 [1] : vector<8x32xf32> to vector<8xf32>
    %56 = vector.shape_cast %55 : vector<8xf32> to vector<8x1xf32>
    %cst_22 = arith.constant 3.200000e+01 : f32
    %57 = vector.broadcast %cst_22 : f32 to vector<8x1xf32>
    %58 = arith.divf %56, %57 : vector<8x1xf32>
    %59 = vector.broadcast %58 : vector<8x1xf32> to vector<8x32xf32>
    %60 = arith.subf %54, %59 : vector<8x32xf32>
    %61 = arith.mulf %60, %60 : vector<8x32xf32>
    %cst_23 = arith.constant dense<0.000000e+00> : vector<8xf32>
    %62 = vector.multi_reduction <add>, %61, %cst_23 [1] : vector<8x32xf32> to vector<8xf32>
    %63 = vector.shape_cast %62 : vector<8xf32> to vector<8x1xf32>
    %cst_24 = arith.constant 3.200000e+01 : f32
    %64 = vector.broadcast %cst_24 : f32 to vector<8x1xf32>
    %65 = arith.divf %63, %64 : vector<8x1xf32>
    %66 = vector.broadcast %58 : vector<8x1xf32> to vector<8x32xf32>
    %67 = arith.subf %54, %66 : vector<8x32xf32>
    %cst_25 = arith.constant 9.99999996E-13 : f32
    %68 = vector.broadcast %cst_25 : f32 to vector<8x1xf32>
    %69 = arith.addf %65, %68 : vector<8x1xf32>
    %70 = math.rsqrt %69 : vector<8x1xf32>
    %71 = vector.broadcast %70 : vector<8x1xf32> to vector<8x32xf32>
    %72 = arith.mulf %67, %71 : vector<8x32xf32>
    %73 = vector.broadcast %5 : vector<1x32xf32> to vector<8x32xf32>
    %74 = arith.mulf %72, %73 : vector<8x32xf32>
    %75 = vector.broadcast %6 : vector<1x32xf32> to vector<8x32xf32>
    %76 = arith.addf %74, %75 : vector<8x32xf32>
    %c0_26 = arith.constant 0 : index
    %c0_27 = arith.constant 0 : index
    %77 = vector.load %arg6[%c0_26, %c0_27] : memref<32x64xbf16, #tpu.memory_space<vmem>>, vector<32x64xbf16>
    %78 = arith.truncf %76 : vector<8x32xf32> to vector<8x32xbf16>
    %cst_28 = arith.constant dense<0.000000e+00> : vector<8x64xf32>
    %79 = tpu.matmul %78, %77, %cst_28 {dimension_numbers = #tpu.dot_dimension_numbers<[1], [0], [0], [1], [0, 0, 1, 1], [], []>} : vector<8x32xbf16>, vector<32x64xbf16>, vector<8x64xf32> -> vector<8x64xf32>
    %c0_29 = arith.constant 0 : index
    %c0_30 = arith.constant 0 : index
    %80 = vector.load %arg7[%c0_29, %c0_30] : memref<1x64xf32, #tpu.memory_space<vmem>>, vector<1x64xf32>
    %81 = vector.broadcast %80 : vector<1x64xf32> to vector<8x64xf32>
    %82 = arith.addf %79, %81 : vector<8x64xf32>
    %83 = arith.mulf %82, %82 : vector<8x64xf32>
    %84 = arith.mulf %82, %83 : vector<8x64xf32>
    %cst_31 = arith.constant 4.471500e-02 : f32
    %85 = vector.broadcast %cst_31 : f32 to vector<8x64xf32>
    %86 = arith.mulf %85, %84 : vector<8x64xf32>
    %87 = arith.addf %82, %86 : vector<8x64xf32>
    %cst_32 = arith.constant 0.797884583 : f32
    %88 = vector.broadcast %cst_32 : f32 to vector<8x64xf32>
    %89 = arith.mulf %88, %87 : vector<8x64xf32>
    %90 = math.tanh %89 : vector<8x64xf32>
    %cst_33 = arith.constant 1.000000e+00 : f32
    %91 = vector.broadcast %cst_33 : f32 to vector<8x64xf32>
    %92 = arith.addf %91, %90 : vector<8x64xf32>
    %cst_34 = arith.constant 5.000000e-01 : f32
    %93 = vector.broadcast %cst_34 : f32 to vector<8x64xf32>
    %94 = arith.mulf %93, %92 : vector<8x64xf32>
    %95 = arith.mulf %82, %94 : vector<8x64xf32>
    %c0_35 = arith.constant 0 : index
    %c0_36 = arith.constant 0 : index
    %96 = vector.load %arg8[%c0_35, %c0_36] : memref<64x32xbf16, #tpu.memory_space<vmem>>, vector<64x32xbf16>
    %97 = arith.truncf %95 : vector<8x64xf32> to vector<8x64xbf16>
    %cst_37 = arith.constant dense<0.000000e+00> : vector<8x32xf32>
    %98 = tpu.matmul %97, %96, %cst_37 {dimension_numbers = #tpu.dot_dimension_numbers<[1], [0], [0], [1], [0, 0, 1, 1], [], []>} : vector<8x64xbf16>, vector<64x32xbf16>, vector<8x32xf32> -> vector<8x32xf32>
    %99 = vector.broadcast %7 : vector<1x32xf32> to vector<8x32xf32>
    %100 = arith.addf %98, %99 : vector<8x32xf32>
    %101 = arith.addf %100, %76 : vector<8x32xf32>
    %cst_38 = arith.constant dense<0.000000e+00> : vector<8xf32>
    %102 = vector.multi_reduction <add>, %101, %cst_38 [1] : vector<8x32xf32> to vector<8xf32>
    %103 = vector.shape_cast %102 : vector<8xf32> to vector<8x1xf32>
    %cst_39 = arith.constant 3.200000e+01 : f32
    %104 = vector.broadcast %cst_39 : f32 to vector<8x1xf32>
    %105 = arith.divf %103, %104 : vector<8x1xf32>
    %106 = vector.broadcast %105 : vector<8x1xf32> to vector<8x32xf32>
    %107 = arith.subf %101, %106 : vector<8x32xf32>
    %108 = arith.mulf %107, %107 : vector<8x32xf32>
    %cst_40 = arith.constant dense<0.000000e+00> : vector<8xf32>
    %109 = vector.multi_reduction <add>, %108, %cst_40 [1] : vector<8x32xf32> to vector<8xf32>
    %110 = vector.shape_cast %109 : vector<8xf32> to vector<8x1xf32>
    %cst_41 = arith.constant 3.200000e+01 : f32
    %111 = vector.broadcast %cst_41 : f32 to vector<8x1xf32>
    %112 = arith.divf %110, %111 : vector<8x1xf32>
    %113 = vector.broadcast %105 : vector<8x1xf32> to vector<8x32xf32>
    %114 = arith.subf %101, %113 : vector<8x32xf32>
    %cst_42 = arith.constant 9.99999996E-13 : f32
    %115 = vector.broadcast %cst_42 : f32 to vector<8x1xf32>
    %116 = arith.addf %112, %115 : vector<8x1xf32>
    %117 = math.rsqrt %116 : vector<8x1xf32>
    %118 = vector.broadcast %117 : vector<8x1xf32> to vector<8x32xf32>
    %119 = arith.mulf %114, %118 : vector<8x32xf32>
    %120 = vector.broadcast %8 : vector<1x32xf32> to vector<8x32xf32>
    %121 = arith.mulf %119, %120 : vector<8x32xf32>
    %122 = vector.broadcast %9 : vector<1x32xf32> to vector<8x32xf32>
    %123 = arith.addf %121, %122 : vector<8x32xf32>
    %124 = arith.truncf %123 : vector<8x32xf32> to vector<8x32xbf16>
    %c0_43 = arith.constant 0 : index
    %c0_44 = arith.constant 0 : index
    %c0_45 = arith.constant 0 : index
    %125 = vector.load %arg10[%c0_43, %c0_44, %c0_45] : memref<1x8x32xbf16, #tpu.memory_space<vmem>>, vector<1x8x32xbf16>
    %126 = vector.shape_cast %125 : vector<1x8x32xbf16> to vector<8x32xbf16>
    %127 = vector.shape_cast %124 : vector<8x32xbf16> to vector<1x8x32xbf16>
    tpu.vector_store %arg10[%c0_43, %c0_44, %c0_45], %127 {strides = array<i32>} : memref<1x8x32xbf16, #tpu.memory_space<vmem>>, vector<1x8x32xbf16>,
    return
  }
  func.func @transform_0(%arg0: i32) -> (i32, i32, i32) {
    %c0_i32 = arith.constant 0 : i32
    %c0_i32_0 = arith.constant 0 : i32
    %c0_i32_1 = arith.constant 0 : i32
    return %arg0, %c0_i32, %c0_i32_0 : i32, i32, i32
  }
  func.func @transform_1(%arg0: i32) -> (i32, i32, i32) {
    %c0_i32 = arith.constant 0 : i32
    %c0_i32_0 = arith.constant 0 : i32
    %c0_i32_1 = arith.constant 0 : i32
    return %arg0, %c0_i32, %c0_i32_0 : i32, i32, i32
  }
  func.func @transform_2(%arg0: i32) -> (i32, i32) {
    %c0_i32 = arith.constant 0 : i32
    %c0_i32_0 = arith.constant 0 : i32
    %c0_i32_1 = arith.constant 0 : i32
    return %c0_i32, %c0_i32_0 : i32, i32
  }
  func.func @transform_3(%arg0: i32) -> (i32, i32) {
    %c0_i32 = arith.constant 0 : i32
    %c0_i32_0 = arith.constant 0 : i32
    %c0_i32_1 = arith.constant 0 : i32
    return %c0_i32, %c0_i32_0 : i32, i32
  }
  func.func @transform_4(%arg0: i32) -> (i32, i32) {
    %c0_i32 = arith.constant 0 : i32
    %c0_i32_0 = arith.constant 0 : i32
    %c0_i32_1 = arith.constant 0 : i32
    return %c0_i32, %c0_i32_0 : i32, i32
  }
  func.func @transform_5(%arg0: i32) -> (i32, i32) {
    %c0_i32 = arith.constant 0 : i32
    %c0_i32_0 = arith.constant 0 : i32
    %c0_i32_1 = arith.constant 0 : i32
    return %c0_i32, %c0_i32_0 : i32, i32
  }
  func.func @transform_6(%arg0: i32) -> (i32, i32) {
    %c0_i32 = arith.constant 0 : i32
    %c0_i32_0 = arith.constant 0 : i32
    %c0_i32_1 = arith.constant 0 : i32
    return %c0_i32, %c0_i32_0 : i32, i32
  }
  func.func @transform_7(%arg0: i32) -> (i32, i32) {
    %c0_i32 = arith.constant 0 : i32
    %c0_i32_0 = arith.constant 0 : i32
    %c0_i32_1 = arith.constant 0 : i32
    return %c0_i32, %c0_i32_0 : i32, i32
  }
  func.func @transform_8(%arg0: i32) -> (i32, i32) {
    %c0_i32 = arith.constant 0 : i32
    %c0_i32_0 = arith.constant 0 : i32
    %c0_i32_1 = arith.constant 0 : i32
    return %c0_i32, %c0_i32_0 : i32, i32
  }
  func.func @transform_9(%arg0: i32) -> (i32, i32, i32) {
    %c0_i32 = arith.constant 0 : i32
    %c0_i32_0 = arith.constant 0 : i32
    %c0_i32_1 = arith.constant 0 : i32
    return %arg0, %c0_i32, %c0_i32_0 : i32, i32, i32
  }
}

</mosaic_0001>

<bundles_post_ra>
// kernel: bert_forward.4
= control target key start
LH: loop header
LB: loop body
LE: loop exit
PB: predicated region body
PF: predicated region fallthrough
CT: control target
= control target key end

     0   :  { %vm18_vm0 = vcmask 261120   ;;  %vm70_vm1 = vcmask 257024   ;;  %s129_s0 = inlined_call_operand.vmem [shape: f32[16,32], index: 0, kind: input, shape index: {}]   ;;  %s130_s1 = inlined_call_operand.vmem [shape: f32[1,32], index: 1, kind: input, shape index: {}]   ;;  %s131_s2 = inlined_call_operand.vmem [shape: f32[1,32], index: 2, kind: input, shape index: {}]   ;;  %s132_s3 = inlined_call_operand.vmem [shape: bf16[16,32], index: 3, kind: output, shape index: {}]  }
   0x1   :  { %v14_v0 = vld [vmem:[%s129_s0] sm:$0xff]  ;;  %v15_v1 = vld [vmem:[%s129_s0 + $0x8] sm:$0xff] }
   0x2   :  { %v19_v2 = vsel %vm18_vm0, %v14_v0, 0.0  ;;  %v22_v3 = vsel %vm18_vm0, %v15_v1, 0.0  ;;  %v77_v21 = vld [vmem:[%s130_s1] ss:$0 sm:$0xff] }
   0x3   :  { %20 = vadd.xlane.f32.xlu0 %v19_v2  ;;  %v78_v23 = vld [vmem:[%s131_s2] ss:$0 sm:$0xff] }
   0x7   :  { %23 = vadd.xlane.f32.xlu0 %v22_v3 }
  0x8c   :  { %v21_v4 = vpop.xlane.xlu0 %20 }
  0x8d   :  { %v26_v5 = vmul.f32 0.03125, %v21_v4 }
  0x8f   :  { %v28_v6 = vsub.f32 %v14_v0, %v26_v5 }
  0x90   :  { %v24_v7 = vpop.xlane.xlu0 %23 }
  0x91   :  { %v27_v8 = vmul.f32 0.03125, %v24_v7  ;;  %v30_v9 = vmul.f32 %v28_v6, %v28_v6 }
  0x93   :  { %v29_v10 = vsub.f32 %v15_v1, %v27_v8  ;;  %v32_v11 = vsel %vm18_vm0, %v30_v9, 0.0 }
  0x94   :  { %33 = vadd.xlane.f32.xlu1 %v32_v11 }
  0x95   :  { %v31_v12 = vmul.f32 %v29_v10, %v29_v10 }
  0x97   :  { %v35_v13 = vsel %vm18_vm0, %v31_v12, 0.0 }
  0x98   :  { %36 = vadd.xlane.f32.xlu1 %v35_v13 }
 0x11d   :  { %v34_v14 = vpop.xlane.xlu1 %33 }
 0x11e   :  { %v38_v15 = vmul.f32 0.03125, %v34_v14 }
 0x120   :  { %v40_v16 = vadd.f32 1e-12, %v38_v15 }
 0x121   :  { %v37_v17 = vpop.xlane.xlu1 %36 }
 0x122   :  { %83 = vrsqrt.f32 %v40_v16  ;;  %v39_v18 = vmul.f32 0.03125, %v37_v17 }
 0x124   :  { %v41_v19 = vadd.f32 1e-12, %v39_v18 }
 0x126   :  { %85 = vrsqrt.f32 %v41_v19 }
 0x12f   :  { %v84_v20 = vpop.eup %83 }
 0x130   :  { %v44_v22 = vmul.f32 %v84_v20, %v28_v6 }
 0x132   :  { %v52_v24 = vmul.f32 %v77_v21, %v44_v22 }
 0x133   :  { %v86_v25 = vpop.eup %85 }
 0x134   :  { %v60_v26 = vadd.f32 %v78_v23, %v52_v24  ;;  %v45_v27 = vmul.f32 %v86_v25, %v29_v10 }
 0x136   :  { %v81_v28 = vpack.c.bf16 %v60_v26, %v60_v26  ;;  %v53_v29 = vmul.f32 %v77_v21, %v45_v27 }
 0x138   :  { %71 = vst.msk [vmem:[%s132_s3] sm:$0xf] %vm70_vm1, %v81_v28  ;;  %v61_v30 = vadd.f32 %v78_v23, %v53_v29 }
 0x13a   :  { %v82_v31 = vpack.c.bf16 %v61_v30, %v61_v30 }
 0x13c   :  { %72 = vst.msk [vmem:[%s132_s3 + $0x4] sm:$0xf] %vm70_vm1, %v82_v31 }

// kernel: bert_forward.7
= control target key start
LH: loop header
LB: loop body
LE: loop exit
PB: predicated region body
PF: predicated region fallthrough
CT: control target
= control target key end

     0   :  { %v201_v0 = vmov 0.0   ;;  %vm202_vm0 = vmmov 0   ;;  %vm45_vm1 = vcmask 261120   ;;  %vm157_vm2 = vcmask 82944   ;;  %s259_s1 = inlined_call_operand.vmem [shape: bf16[32,32], index: 1, kind: input, shape index: {}]   ;;  %s260_s0 = inlined_call_operand.vmem [shape: bf16[2,32], index: 0, kind: input, shape index: {}]   ;;  %s261_s3 = inlined_call_operand.vmem [shape: bf16[32,11], index: 3, kind: input, shape index: {}]   ;;  %s262_s2 = inlined_call_operand.vmem [shape: f32[1,32], index: 2, kind: input, shape index: {}]   ;;  %s263_s4 = inlined_call_operand.vmem [shape: f32[1,11], index: 4, kind: input, shape index: {}]   ;;  %s264_s5 = inlined_call_operand.vmem [shape: f32[2,11], index: 5, kind: output, shape index: {}]  }
   0x1   :  { %177 = vmatprep.subr.bf16.mxu0 %v201_v0  ;;  %v195_v1 = vld [vmem:[%s259_s1 + $0x8] sm:$0xff]   ;;  %181 = vmatprep.mubr.msk.bf16.mxu0 %vm202_vm0, %v201_v0  ;;  %v196_v2 = vld [vmem:[%s259_s1] sm:$0xff]  }
   0x2   :  { %185 = vmatprep.subr.bf16.mxu1 %v201_v0  ;;  %189 = vmatprep.mubr.msk.bf16.mxu1 %vm202_vm0, %v201_v0  ;;  %v21_v3 = vld [vmem:[%s260_s0] sm:$0x1]  ;;  %v197_v4 = vld [vmem:[%s261_s3 + $0x8] sm:$0xff]  }
   0x3   :  { %178 = vmatpush3.bf16.msra.mxu0 %v195_v1  ;;  %186 = vmatpush3.bf16.msra.mxu1 %v197_v4  ;;  %v198_v5 = vld [vmem:[%s261_s3] sm:$0xff]  }
   0x4   :  { %179 = vmatprep.subr.bf16.mxu0 %v201_v0  ;;  %187 = vmatprep.subr.bf16.mxu1 %v201_v0  ;;  %v163_v6 = vld [vmem:[%s262_s2] ss:$0 sm:$0xff] }
   0x5   :  { %v167_v14 = vld [vmem:[%s263_s4] ss:$0 sm:$0xff] }
   0x7   :  { %180 = vmatpush3.bf16.msra.mxu0 %v196_v2  ;;  %188 = vmatpush3.bf16.msra.mxu1 %v198_v5 }
   0xa   :  { %182 = vmatmul.mubr.msk.bf16.vlgmr.msra.gmra.mxu0 %vm45_vm1, %v21_v3 }
  0xca   :  { %v83_v7 = vpop.f32.mrf.mxu0 }
  0xcb   :  { %v84_v8 = vadd.f32 %v163_v6, %v83_v7 }
  0xcc   :  { %v183_v9 = vpop.f32.mrf.mxu0 }
  0xcd   :  { %199 = vtanh.f32 %v84_v8 }
  0xce   :  { %v86_v10 = vpop.f32.mrf.mxu0 }
  0xd0   :  { %v184_v11 = vpop.f32.mrf.mxu0 }
  0xda   :  { %v200_v12 = vpop.eup %199 }
  0xdb   :  { %v94_v13 = vpack.c.bf16 %v200_v12, %v200_v12 }
  0xdd   :  { %190 = vmatmul.mubr.msk.bf16.vlgmr.msra.gmra.mxu1 %vm45_vm1, %v94_v13 }
 0x19d   :  { %v151_v15 = vpop.f32.mrf.mxu1 }
 0x19e   :  { %v152_v16 = vadd.f32 %v167_v14, %v151_v15 }
 0x19f   :  { %v191_v17 = vpop.f32.mrf.mxu1 }
 0x1a0   :  { %158 = vst.msk [vmem:[%s264_s5] sm:$0x3] %vm157_vm2, %v152_v16 }
 0x1a1   :  { %v154_v18 = vpop.f32.mrf.mxu1 }
 0x1a3   :  { %v192_v19 = vpop.f32.mrf.mxu1 }

// kernel: bert_forward.5
= control target key start
LH: loop header
LB: loop body
LE: loop exit
PB: predicated region body
PF: predicated region fallthrough
CT: control target
= control target key end

     0   :  { %s1897_s30 = smov 0   ;;  %s2091_s0 = inlined_call_operand.vmem [shape: bf16[2,8,32], index: 0, kind: input, shape index: {}]   ;;  %s2092_s1 = inlined_call_operand.vmem [shape: f32[2,1,8], index: 1, kind: input, shape index: {}]   ;;  %s2093_s2 = inlined_call_operand.vmem [shape: bf16[32,96], index: 2, kind: input, shape index: {}]   ;;  %s2094_s3 = inlined_call_operand.vmem [shape: f32[1,96], index: 3, kind: input, shape index: {}]   ;;  %s2095_s4 = inlined_call_operand.vmem [shape: bf16[32,32], index: 4, kind: input, shape index: {}]   ;;  %s2096_s5 = inlined_call_operand.vmem [shape: bf16[32,64], index: 5, kind: input, shape index: {}]   ;;  %s2097_s6 = inlined_call_operand.vmem [shape: f32[1,64], index: 6, kind: input, shape index: {}]   ;;  %s2098_s7 = inlined_call_operand.vmem [shape: bf16[64,32], index: 7, kind: input, shape index: {}]   ;;  %s2099_s8 = inlined_call_operand.vmem [shape: f32[6,32], index: 8, kind: input, shape index: {}]   ;;  %s2100_s9 = inlined_call_operand.vmem [shape: bf16[2,8,32], index: 9, kind: output, shape index: {}]  }
   0x1 LB: > { %s1624_s10 = sadd.s32 4294967295, %s1833_s30   ;;  %p1628_p0 = scmp.ge.s32.totalorder %s1833_s30, 1  ;;  %s1833_s30 = sphi %s1897_s30, %s19_s30  }
   0x2   : > { %p294_p1 = scmp.lt.s32.totalorder %s1833_s30, 3 }
   0x4   : > { %p295_p2 = pnand %p1628_p0, %p294_p1 }
   0x5   : > { %p331_p3 = scmp.lt.s32.totalorder (!%p295_p2), %s1624_s10, 1  ;;  %s1837_s21 = smov (!%p295_p2), 104  }
   0x6   : > { %298 = sbr.rel (%p295_p2) target bundleno = 2866 (0xb32), region = 56  ;;  %s1838_s22 = smov (!%p295_p2), 120  }
   0x7   : > { %s1839_s23 = smov (!%p295_p2), 96   ;;  %s1840_s24 = smov (!%p295_p2), 112  }
   0x8   : > { %s1841_s28 = smov (!%p295_p2), 64   ;;  %s1844_s14 = smov (!%p295_p2), 16  }
   0x9   : > { %s1845_s16 = smov (!%p295_p2), 8   ;;  %s1846_s17 = smov (!%p295_p2), 24  }
   0xb   : > { %v1795_v0 = vld [vmem:[%s2093_s2 + $0x8] sm:$0xff]   ;;  %v1835_v1 = vmov 0.0   ;;  %v1796_v2 = vld [vmem:[%s2093_s2] sm:$0xff]   ;;  %vm1836_vm0 = vmmov 0   ;;  %s2102_s10 = smov (!%p331_p3, %s1624_s10), 1  ;;  %vm372_vm1 = vcmask 261120   ;;  %v691_v26 = vlaneseq }
   0xc   : > { %1690 = vmatprep.subr.bf16.mxu0 %v1835_v1  ;;  %1698 = vmatprep.subr.bf16.mxu1 %v1835_v1  ;;  %s1629_s15 = sshll.u32 %s2102_s10, 2  ;;  %v1632_v4 = vld [vmem:[%s2094_s3] ss:$0 sm:$0xff]  ;;  %vm504_vm2 = vcmask 1043456   ;;  %vm500_vm3 = vcmask 64512   ;;  %s337_s27 = scalar_lea.vmem %s2092_s1, %s2102_s10  ;;  %vm1285_vm4 = vcmask 130048  }
   0xd   : > { %1691 = vmatpush3.bf16.msra.mxu0 %v1795_v0  ;;  %1694 = vmatprep.mubr.msk.bf16.mxu0 %vm1836_vm0, %v1835_v1  ;;  %s334_s18 = scalar_lea.vmem %s2091_s0, %s1629_s15  ;;  %v346_v27 = vld [vmem:[%s337_s27] sm:$0x1]  ;;  %v1979_v29 = vshrl.u32 %v691_v26, 7  ;;  %vm1287_vm5 = vcmask 195584   ;;  %vm1491_vm6 = vcmask 523264   ;;  %vm1560_vm7 = vcmask 257024  }
   0xe   : > { %1692 = vmatprep.subr.bf16.mxu0 %v1835_v1  ;;  %1700 = vmatprep.mubr.msk.bf16.mxu1 %vm1836_vm0, %v1835_v1  ;;  %v1927_v3 = vld [vmem:[%s334_s18] sm:$0xf]  ;;  %v1631_v28 = vadd.f32 -1.0, %v346_v27  ;;  %s341_s18 = scalar_lea.vmem %s2100_s9, %s1629_s15 }
   0xf   : > { %v693_v31 = vsub.s32 0, %v1979_v29 }
  0x10   : > { %v348_v30 = vmul.f32 1e+09, %v1631_v28 }
  0x11   : > { %1693 = vmatpush3.bf16.msra.mxu0 %v1796_v2 }
  0x12   : > { %1722 = vmatprep.subr.bf16.mxu0 %v1835_v1  ;;  %v694_v32 = vrot.slane %v348_v30, %v693_v31 }
  0x14   : > { %1695 = vmatmul.mubr.msk.bf16.vlgmr.msra.gmra.mxu0 %vm372_vm1, %v1927_v3 }
  0x15   : > { %1724 = vmatprep.mubr.msk.bf16.mxu0 %vm1836_vm0, %v1835_v1 }
  0xd4   : > { %v410_v5 = vpop.f32.mrf.mxu0 }
  0xd5   : > { %v411_v6 = vadd.f32 %v1632_v4, %v410_v5 }
  0xd6   : > { %v1696_v7 = vpop.f32.mrf.mxu0 }
  0xd7   : > { %v1936_v8 = vpack.c.bf16 %v411_v6, %v411_v6 }
  0xd8   : > { %v413_v9 = vpop.f32.mrf.mxu0 }
  0xd9   : > { %422 = vrot.lane.b32.xlu1 %v1936_v8, %s1837_s21  ;;  %418 = vrot.lane.b32.xlu0 %v1936_v8, %s1838_s22 }
  0xda   : > { %v1697_v10 = vpop.f32.mrf.mxu0 }
  0xdd   : > { %424 = vrot.lane.b32.xlu1 %v1936_v8, %s1839_s23  ;;  %420 = vrot.lane.b32.xlu0 %v1936_v8, %s1840_s24 }
 0x14b   : > { %v1942_v11 = vpop.permute.xlu0 %418  ;;  %v1945_v12 = vpop.permute.xlu1 %422 }
 0x14c   : > { %426 = vrot.lane.b32.xlu0 %v1942_v11, %s1839_s23 }
 0x14f   : > { %v1947_v13 = vpop.permute.xlu0 %420  ;;  %v425_v14 = vpop.permute.xlu1 %424 }
 0x150   : > { %430 = vrot.lane.b32.xlu0 %v1945_v12, %s1839_s23  ;;  %428 = vrot.lane.b32.xlu1 %v1947_v13, %s1839_s23 }
 0x173   : > { %436 = vxpose.xlu1.c.b16.start.end [1/1] (short) (narrow) %v425_v14, 16 }
 0x1be   : > { %v427_v15 = vpop.permute.xlu0 %426 }
 0x1bf   : > { %452 = vxpose.xlu0.c.b16.start.end [1/1] (short) (narrow) %v427_v15, 16 }
 0x1c2   : > { %v429_v16 = vpop.permute.xlu1 %428  ;;  %v431_v17 = vpop.permute.xlu0 %430 }
 0x1c3   : > { %468 = vxpose.xlu0.c.b16.start.end [1/1] (short) (narrow) %v429_v16, 16  ;;  %484 = vxpose.xlu1.c.b16.start.end [1/1] (short) (narrow) %v431_v17, 16 }
 0x1d5   : > { %v444_v18 = vpop.trf.xlu1 }
 0x1d6   : > { %v506_v19 = vsel %vm504_vm2, %v444_v18, 0 }
 0x1d7   : > { %1699 = vmatpush3.bf16.msra.mxu1 %v506_v19 }
 0x1d8   : > { %1704 = vmatprep.subr.bf16.mxu1 %v1835_v1 }
 0x1da   : > { %1701 = vmatmul.mubr.msk.bf16.vlgmr.msra.gmra.mxu1 %vm500_vm3, %v1936_v8 }
 0x1db   : > { %1706 = vmatprep.mubr.msk.bf16.mxu1 %vm1836_vm0, %v1835_v1 }
 0x221   : > { %v460_v20 = vpop.trf.xlu0 }
 0x222   : > { %v552_v21 = vsel %vm504_vm2, %v460_v20, 0 }
 0x223   : > { %1705 = vmatpush3.bf16.msra.mxu1 %v552_v21 }
 0x224   : > { %1710 = vmatprep.subr.bf16.mxu1 %v1835_v1 }
 0x225   : > { %v476_v22 = vpop.trf.xlu0  ;;  %v492_v24 = vpop.trf.xlu1 }
 0x226   : > { %1707 = vmatmul.mubr.msk.bf16.vlgmr.msra.gmra.mxu1 %vm500_vm3, %v1942_v11  ;;  %v598_v23 = vsel %vm504_vm2, %v476_v22, 0  ;;  %v644_v25 = vsel %vm504_vm2, %v492_v24, 0 }
 0x227   : > { %1711 = vmatpush3.bf16.msra.mxu1 %v598_v23  ;;  %1712 = vmatprep.mubr.msk.bf16.mxu1 %vm1836_vm0, %v1835_v1 }
 0x228   : > { %1716 = vmatprep.subr.bf16.mxu1 %v1835_v1 }
 0x22e   : > { %1713 = vmatmul.mubr.msk.bf16.vlgmr.msra.gmra.mxu1 %vm500_vm3, %v1947_v13 }
 0x22f   : > { %1717 = vmatpush3.bf16.msra.mxu1 %v644_v25  ;;  %1718 = vmatprep.mubr.msk.bf16.mxu1 %vm1836_vm0, %v1835_v1 }
 0x230   : > { %1728 = vmatprep.subr.bf16.mxu1 %v1835_v1 }
 0x236   : > { %1719 = vmatmul.mubr.msk.bf16.vlgmr.msra.gmra.mxu1 %vm500_vm3, %v1945_v12 }
 0x237   : > { %1730 = vmatprep.mubr.msk.bf16.mxu1 %vm1836_vm0, %v1835_v1 }
 0x29a   : > { %v542_v33 = vpop.f32.mrf.mxu1 }
 0x29b   : > { %v686_v34 = vmul.f32 0.35355338, %v542_v33 }
 0x29c   : > { %v1702_v35 = vpop.f32.mrf.mxu1 }
 0x29d   : > { %v696_v36 = vadd.f32 %v694_v32, %v686_v34 }
 0x29e   : > { %v545_v37 = vpop.f32.mrf.mxu1 }
 0x29f   : > { %v700_v38 = vsel %vm500_vm3, %v696_v36, -inf }
 0x2a0   : > { %v1703_v39 = vpop.f32.mrf.mxu1  ;;  %701 = vmax.xlane.f32.xlu0 %v700_v38 }
 0x2e6   : > { %v588_v40 = vpop.f32.mrf.mxu1 }
 0x2e7   : > { %v687_v41 = vmul.f32 0.35355338, %v588_v40 }
 0x2e8   : > { %v1708_v42 = vpop.f32.mrf.mxu1 }
 0x2e9   : > { %v697_v43 = vadd.f32 %v694_v32, %v687_v41 }
 0x2ea   : > { %v591_v44 = vpop.f32.mrf.mxu1 }
 0x2eb   : > { %v703_v45 = vsel %vm500_vm3, %v697_v43, -inf }
 0x2ec   : > { %704 = vmax.xlane.f32.xlu1 %v703_v45  ;;  %v1709_v46 = vpop.f32.mrf.mxu1 }
 0x2ee   : > { %v634_v47 = vpop.f32.mrf.mxu1 }
 0x2ef   : > { %v688_v48 = vmul.f32 0.35355338, %v634_v47 }
 0x2f0   : > { %v1714_v49 = vpop.f32.mrf.mxu1 }
 0x2f1   : > { %v698_v50 = vadd.f32 %v694_v32, %v688_v48 }
 0x2f2   : > { %v637_v51 = vpop.f32.mrf.mxu1 }
 0x2f3   : > { %v706_v52 = vsel %vm500_vm3, %v698_v50, -inf }
 0x2f4   : > { %707 = vmax.xlane.f32.xlu0 %v706_v52  ;;  %v1715_v53 = vpop.f32.mrf.mxu1 }
 0x2f6   : > { %v680_v54 = vpop.f32.mrf.mxu1 }
 0x2f7   : > { %v689_v55 = vmul.f32 0.35355338, %v680_v54 }
 0x2f8   : > { %v1720_v56 = vpop.f32.mrf.mxu1 }
 0x2f9   : > { %v699_v57 = vadd.f32 %v694_v32, %v689_v55 }
 0x2fa   : > { %v683_v58 = vpop.f32.mrf.mxu1 }
 0x2fb   : > { %v709_v59 = vsel %vm500_vm3, %v699_v57, -inf }
 0x2fc   : > { %710 = vmax.xlane.f32.xlu1 %v709_v59  ;;  %v1721_v60 = vpop.f32.mrf.mxu1 }
 0x30a   : > { %748 = vrot.lane.b32.xlu0 %v1936_v8, %s1841_s28 }
 0x30d   : > { %750 = vrot.lane.b32.xlu1 %v1942_v11, %s1841_s28 }
 0x329   : > { %v702_v61 = vpop.xlane.xlu0 %701 }
 0x32a   : > { %v712_v62 = vsub.f32 %v696_v36, %v702_v61 }
 0x32c   : > { %v716_v63 = vmul.f32 1.442695, %v712_v62 }
 0x32e   : > { %1805 = vpow2.f32 %v716_v63 }
 0x33b   : > { %v1806_v0 = vpop.eup %1805 }
 0x33c   : > { %v724_v2 = vsel %vm500_vm3, %v1806_v0, 0.0 }
 0x33d   : > { %725 = vadd.xlane.f32.xlu0 %v724_v2 }
 0x375   : > { %v705_v4 = vpop.xlane.xlu1 %704 }
 0x376   : > { %v713_v5 = vsub.f32 %v697_v43, %v705_v4  ;;  %v1842_v4 = vmov 1983009808  }
 0x378   : > { %v718_v6 = vmul.f32 1.442695, %v713_v5  ;;  %v1139_v5 = vunpack.c.l.s4 %v1842_v4 }
 0x37a   : > { %1807 = vpow2.f32 %v718_v6  ;;  %v1843_v6 = vmov 1934713408  }
 0x37d   : > { %v708_v7 = vpop.xlane.xlu0 %707 }
 0x37e   : > { %v714_v9 = vsub.f32 %v698_v50, %v708_v7  ;;  %v1171_v7 = vunpack.c.l.s4 %v1843_v6 }
 0x380   : > { %v720_v10 = vmul.f32 1.442695, %v714_v9  ;;  %v1140_v9 = vunpack.c.0.s8 %v1139_v5 }
 0x381   : > { %v749_v21 = vpop.permute.xlu0 %748 }
 0x382   : > { %1809 = vpow2.f32 %v720_v10 }
 0x385   : > { %v711_v8 = vpop.xlane.xlu1 %710 }
 0x386   : > { %v715_v14 = vsub.f32 %v699_v57, %v711_v8 }
 0x387   : > { %v1808_v15 = vpop.eup %1807 }
 0x388   : > { %v722_v11 = vmul.f32 1.442695, %v715_v14  ;;  %v727_v16 = vsel %vm500_vm3, %v1808_v15, 0.0  ;;  %v1172_v14 = vunpack.c.0.s8 %v1171_v7 }
 0x389   : > { %728 = vadd.xlane.f32.xlu1 %v727_v16  ;;  %v751_v23 = vpop.permute.xlu1 %750 }
 0x38a   : > { %1811 = vpow2.f32 %v722_v11 }
 0x38f   : > { %v1810_v17 = vpop.eup %1809 }
 0x390   : > { %v730_v18 = vsel %vm500_vm3, %v1810_v17, 0.0 }
 0x391   : > { %731 = vadd.xlane.f32.xlu1 %v730_v18 }
 0x397   : > { %v1812_v19 = vpop.eup %1811 }
 0x398   : > { %v733_v20 = vsel %vm500_vm3, %v1812_v19, 0.0 }
 0x399   : > { %734 = vadd.xlane.f32.xlu0 %v733_v20  ;;  %v1175_v20 = vsub.s32 %v1172_v14, %v1979_v29 }
 0x3a2   : > { %754 = vrot.lane.b32.xlu1 %v1945_v12, %s1841_s28 }
 0x3af   : > { %752 = vrot.lane.b32.xlu0 %v1947_v13, %s1841_s28 }
 0x3c5   : > { %760 = vxpose.xlu1.c.b16.start.end [1/1] (short) (narrow) %v749_v21, 16 }
 0x3c6   : > { %v726_v22 = vpop.xlane.xlu0 %725 }
 0x3c7   : > { %1813 = vrcp.f32 %v726_v22 }
 0x3cd   : > { %776 = vxpose.xlu0.c.b16.start.end [1/1] (short) (narrow) %v751_v23, 16 }
 0x3d4   : > { %v1814_v24 = vpop.eup %1813 }
 0x3d5   : > { %v740_v25 = vmul.f32 %v1814_v24, %v1806_v0 }
 0x3d7   : > { %v744_v26 = vpack.c.bf16 %v740_v25, %v740_v25  ;;  %v1797_v25 = vld [vmem:[%s2095_s4 + $0x8] sm:$0xff]  }
 0x3d9   : > { %v828_v27 = vsel %vm500_vm3, %v744_v26, 0 }
 0x3da   : > { %1723 = vmatpush3.bf16.xpose.msra.mxu0 %v828_v27 }
 0x3db   : > { %1734 = vmatprep.subr.bf16.mxu0 %v1835_v1 }
 0x412   : > { %v729_v28 = vpop.xlane.xlu1 %728 }
 0x413   : > { %1815 = vrcp.f32 %v729_v28 }
 0x41a   : > { %v732_v12 = vpop.xlane.xlu1 %731 }
 0x41b   : > { %1817 = vrcp.f32 %v732_v12 }
 0x41e   : > { %v755_v30 = vpop.permute.xlu1 %754 }
 0x41f   : > { %808 = vxpose.xlu1.c.b16.start.end [1/1] (short) (narrow) %v755_v30, 16 }
 0x420   : > { %v1816_v13 = vpop.eup %1815 }
 0x421   : > { %v741_v32 = vmul.f32 %v1816_v13, %v1808_v15  ;;  %v1143_v15 = vsub.s32 %v1140_v9, %v1979_v29 }
 0x422   : > { %v735_v33 = vpop.xlane.xlu0 %734 }
 0x423   : > { %1819 = vrcp.f32 %v735_v33  ;;  %v745_v34 = vpack.c.bf16 %v741_v32, %v741_v32 }
 0x425   : > { %v874_v35 = vsel %vm500_vm3, %v745_v34, 0  ;;  %v1798_v34 = vld [vmem:[%s2095_s4] sm:$0xff]  }
 0x426   : > { %1729 = vmatpush3.bf16.xpose.msra.mxu1 %v874_v35  ;;  %v753_v36 = vpop.permute.xlu0 %752 }
 0x427   : > { %792 = vxpose.xlu0.c.b16.start.end [1/1] (short) (narrow) %v753_v36, 16  ;;  %v768_v37 = vpop.trf.xlu1  ;;  %1740 = vmatprep.subr.bf16.mxu1 %v1835_v1 }
 0x428   : > { %v1818_v38 = vpop.eup %1817  ;;  %1725 = vmatmul.mubr.msk.bf16.vlgmr.msra.gmra.mxu0 %vm500_vm3, %v768_v37 }
 0x429   : > { %v742_v39 = vmul.f32 %v1818_v38, %v1810_v17  ;;  %1736 = vmatprep.mubr.msk.bf16.mxu0 %vm1836_vm0, %v1835_v1 }
 0x42b   : > { %v746_v40 = vpack.c.bf16 %v742_v39, %v742_v39 }
 0x42d   : > { %v920_v41 = vsel %vm500_vm3, %v746_v40, 0 }
 0x42e   : > { %1735 = vmatpush3.bf16.xpose.msra.mxu0 %v920_v41 }
 0x42f   : > { %v784_v42 = vpop.trf.xlu0  ;;  %1746 = vmatprep.subr.bf16.mxu0 %v1835_v1 }
 0x430   : > { %v1820_v43 = vpop.eup %1819  ;;  %1731 = vmatmul.mubr.msk.bf16.vlgmr.msra.gmra.mxu1 %vm500_vm3, %v784_v42 }
 0x431   : > { %v743_v44 = vmul.f32 %v1820_v43, %v1812_v19  ;;  %1742 = vmatprep.mubr.msk.bf16.mxu1 %vm1836_vm0, %v1835_v1 }
 0x433   : > { %v747_v45 = vpack.c.bf16 %v743_v44, %v743_v44 }
 0x435   : > { %v966_v46 = vsel %vm500_vm3, %v747_v45, 0 }
 0x436   : > { %1741 = vmatpush3.bf16.xpose.msra.mxu1 %v966_v46 }
 0x437   : > { %1754 = vmatprep.subr.bf16.mxu1 %v1835_v1 }
 0x481   : > { %v816_v47 = vpop.trf.xlu1 }
 0x482   : > { %1743 = vmatmul.mubr.msk.bf16.vlgmr.msra.gmra.mxu1 %vm500_vm3, %v816_v47 }
 0x483   : > { %1758 = vmatprep.mubr.msk.bf16.mxu1 %vm1836_vm0, %v1835_v1 }
 0x489   : > { %v800_v48 = vpop.trf.xlu0 }
 0x48a   : > { %1737 = vmatmul.mubr.msk.bf16.vlgmr.msra.gmra.mxu0 %vm500_vm3, %v800_v48 }
 0x48b   : > { %1750 = vmatprep.mubr.msk.bf16.mxu0 %vm1836_vm0, %v1835_v1  ;;  %1747 = vmatpush3.bf16.msra.mxu0 %v1797_v25 }
 0x48c   : > { %1748 = vmatprep.subr.bf16.mxu0 %v1835_v1 }
 0x48f   : > { %1749 = vmatpush3.bf16.msra.mxu0 %v1798_v34 }
 0x490   : > { %1762 = vmatprep.subr.bf16.mxu0 %v1835_v1 }
 0x4e8   : > { %v864_v49 = vpop.f32.mrf.mxu0 }
 0x4e9   : > { %1008 = vxpose.xlu0.b32.start.end [1/1] (short) (narrow) %v864_v49, 8 }
 0x4ea   : > { %v1726_v50 = vpop.f32.mrf.mxu0 }
 0x4ec   : > { %v867_v51 = vpop.f32.mrf.mxu0 }
 0x4ee   : > { %v1727_v52 = vpop.f32.mrf.mxu0 }
 0x4f0   : > { %v910_v53 = vpop.f32.mrf.mxu1 }
 0x4f1   : > { %1040 = vxpose.xlu1.b32.start.end [1/1] (short) (narrow) %v910_v53, 8 }
 0x4f2   : > { %v1732_v54 = vpop.f32.mrf.mxu1 }
 0x4f4   : > { %v913_v55 = vpop.f32.mrf.mxu1 }
 0x4f6   : > { %v1733_v56 = vpop.f32.mrf.mxu1 }
 0x542   : > { %v1002_v57 = vpop.f32.mrf.mxu1 }
 0x544   : > { %v1744_v58 = vpop.f32.mrf.mxu1 }
 0x546   : > { %v1005_v59 = vpop.f32.mrf.mxu1 }
 0x548   : > { %v1745_v60 = vpop.f32.mrf.mxu1 }
 0x54a   : > { %v956_v61 = vpop.f32.mrf.mxu0 }
 0x54b   : > { %1072 = vxpose.xlu0.b32.start.end [1/1] (short) (narrow) %v956_v61, 8 }
 0x54c   : > { %v1738_v62 = vpop.f32.mrf.mxu0 }
 0x54d   : > { %v2037_v62 = vld [vmem:[%s2099_s8] sm:$0x3f] }
 0x54e   : > { %v959_v63 = vpop.f32.mrf.mxu0 }
 0x54f   : > { %1104 = vxpose.xlu0.b32.start.end [1/1] (short) (narrow) %v1002_v57, 8  ;;  %v1297_v63 = vrot.slane %v2037_v62, %v693_v31  ;;  %v1800_v31 = vld [vmem:[%s2096_s5] sm:$0xff]  }
 0x550   : > { %v1739_v0 = vpop.f32.mrf.mxu0 }
 0x551   : > { %v344_v0 = vunpack.c.l.bf16 %v1927_v3  ;;  %v1799_v3 = vld [vmem:[%s2096_s5 + $0x8] sm:$0xff]  }
 0x552   : > { %1755 = vmatpush3.bf16.msra.mxu1 %v1799_v3 }
 0x553   : > { %1756 = vmatprep.subr.bf16.mxu1 %v1835_v1 }
 0x556   : > { %1757 = vmatpush3.bf16.msra.mxu1 %v1800_v31 }
 0x565   : > { %v1024_v2 = vpop.trf.xlu0 }
 0x56d   : > { %v1056_v8 = vpop.trf.xlu1 }
 0x5c7   : > { %v1088_v10 = vpop.trf.xlu0 }
 0x5c8   : > { %v1136_v11 = vcombine.low %v1024_v2, %v1088_v10  ;;  %v1137_v16 = vcombine.high %v1024_v2, %v1088_v10 }
 0x5ca   : > { %v1144_v21 = vrot.slane %v1136_v11, %v1143_v15  ;;  %v1151_v22 = vrot.slane %v1137_v16, %v1143_v15 }
 0x5cb   : > { %v1120_v17 = vpop.trf.xlu0 }
 0x5cc   : > { %v1152_v18 = vcombine.low %v1056_v8, %v1120_v17  ;;  %v1153_v19 = vcombine.high %v1056_v8, %v1120_v17 }
 0x5ce   : > { %v1160_v23 = vrot.slane %v1152_v18, %v1143_v15  ;;  %v1167_v24 = vrot.slane %v1153_v19, %v1143_v15 }
 0x5d0   : > { %v1168_v26 = vcombine.low %v1144_v21, %v1160_v23  ;;  %v1169_v27 = vcombine.high %v1144_v21, %v1160_v23  ;;  %v1184_v28 = vcombine.low %v1151_v22, %v1167_v24  ;;  %v1185_v12 = vcombine.high %v1151_v22, %v1167_v24 }
 0x5d1   : > { %v1375_v21 = vsub.s32 2, %v1979_v29 }
 0x5d2   : > { %v1176_v30 = vrot.slane %v1168_v26, %v1175_v20  ;;  %v1183_v13 = vrot.slane %v1169_v27, %v1175_v20  ;;  %v1192_v32 = vrot.slane %v1184_v28, %v1175_v20  ;;  %v1199_v33 = vrot.slane %v1185_v12, %v1175_v20  ;;  %v1801_v12 = vld [vmem:[%s2098_s7 + $0x18] sm:$0xff]  }
 0x5d3   : > { %v1376_v25 = vrot.slane %v2037_v62, %v1375_v21 }
 0x5d4   : > { %v1204_v35 = vcombine.low %v1176_v30, %v1183_v13  ;;  %v1644_v36 = vcombine.high %v1176_v30, %v1183_v13  ;;  %v1220_v37 = vcombine.low %v1192_v32, %v1199_v33  ;;  %v1645_v38 = vcombine.high %v1192_v32, %v1199_v33  ;;  %v1802_v30 = vld [vmem:[%s2098_s7 + $0x10] sm:$0xff]   ;;  %v1803_v13 = vld [vmem:[%s2098_s7 + $0x8] sm:$0xff]   ;;  %v1804_v32 = vld [vmem:[%s2098_s7] sm:$0xff]  }
 0x5d5   : > { %v1649_v33 = vld [vmem:[%s2097_s6] ss:$0 sm:$0xff] }
 0x5d6   : > { %v1211_v39 = vrot.slane %v1204_v35, %v1143_v15  ;;  %v1219_v40 = vrot.slane %v1644_v36, %v1143_v15  ;;  %v1227_v41 = vrot.slane %v1220_v37, %v1143_v15  ;;  %v1235_v42 = vrot.slane %v1645_v38, %v1143_v15 }
 0x5d8   : > { %v1237_v43 = vcombine.high %v1211_v39, %v1219_v40  ;;  %v1253_v44 = vcombine.high %v1227_v41, %v1235_v42  ;;  %v1236_v45 = vcombine.low %v1211_v39, %v1219_v40  ;;  %v1252_v46 = vcombine.low %v1227_v41, %v1235_v42 }
 0x5da   : > { %v1251_v47 = vrot.slane %v1237_v43, %v1175_v20  ;;  %v1267_v48 = vrot.slane %v1253_v44, %v1175_v20  ;;  %v1244_v49 = vrot.slane %v1236_v45, %v1175_v20  ;;  %v1260_v50 = vrot.slane %v1252_v46, %v1175_v20 }
 0x5db   : > { %v1370_v20 = vsub.s32 1, %v1979_v29 }
 0x5dc   : > { %v1270_v51 = vcombine.low %v1251_v47, %v1267_v48  ;;  %v1269_v52 = vcombine.high %v1244_v49, %v1260_v50  ;;  %v1268_v53 = vcombine.low %v1244_v49, %v1260_v50  ;;  %v1271_v54 = vcombine.high %v1251_v47, %v1267_v48 }
 0x5dd   : > { %v1371_v22 = vrot.slane %v2037_v62, %v1370_v20  ;;  %v1465_v48 = vsub.s32 3, %v1979_v29 }
 0x5de   : > { %1277 = vrot.lane.b32.xlu0 %v1270_v51, %s1844_s14  ;;  %1273 = vrot.lane.b32.xlu1 %v1269_v52, %s1845_s16 }
 0x5df   : > { %v1466_v49 = vrot.slane %v2037_v62, %v1465_v48 }
 0x5e2   : > { %1281 = vrot.lane.b32.xlu1 %v1271_v54, %s1846_s17 }
 0x650   : > { %v1274_v55 = vpop.permute.xlu1 %1273  ;;  %v1278_v56 = vpop.permute.xlu0 %1277 }
 0x651   : > { %v1284_v57 = vsel %vm500_vm3, %v1268_v53, %v1274_v55 }
 0x652   : > { %v1286_v59 = vsel %vm1285_vm4, %v1284_v57, %v1278_v56 }
 0x654   : > { %v1282_v58 = vpop.permute.xlu1 %1281 }
 0x655   : > { %v1288_v60 = vsel %vm1287_vm5, %v1286_v59, %v1282_v58 }
 0x656   : > { %v1293_v61 = vpack.c.bf16 %v1288_v60, %v1288_v60 }
 0x658   : > { %1751 = vmatmul.mubr.msk.bf16.vlgmr.msra.gmra.mxu0 %vm372_vm1, %v1293_v61 }
 0x659   : > { %1770 = vmatprep.mubr.msk.bf16.mxu0 %vm1836_vm0, %v1835_v1  ;;  %1763 = vmatpush3.bf16.msra.mxu0 %v1801_v12 }
 0x65a   : > { %1764 = vmatprep.subr.bf16.mxu0 %v1835_v1 }
 0x65d   : > { %1765 = vmatpush3.bf16.msra.mxu0 %v1802_v30 }
 0x65e   : > { %1766 = vmatprep.subr.bf16.mxu0 %v1835_v1 }
 0x661   : > { %1767 = vmatpush3.bf16.msra.mxu0 %v1803_v13 }
 0x662   : > { %1768 = vmatprep.subr.bf16.mxu0 %v1835_v1 }
 0x665   : > { %1769 = vmatpush3.bf16.msra.mxu0 %v1804_v32 }
 0x718   : > { %v1347_v2 = vpop.f32.mrf.mxu0 }
 0x719   : > { %v1348_v4 = vadd.f32 %v1347_v2, %v1297_v63 }
 0x71a   : > { %v1752_v5 = vpop.f32.mrf.mxu0 }
 0x71b   : > { %v1353_v6 = vadd.f32 %v1348_v4, %v344_v0  ;;  %v1551_v4 = vsub.s32 4, %v1979_v29  ;;  %v1556_v5 = vsub.s32 5, %v1979_v29 }
 0x71c   : > { %v1350_v7 = vpop.f32.mrf.mxu0 }
 0x71d   : > { %v1354_v9 = vsel %vm372_vm1, %v1353_v6, 0.0 }
 0x71e   : > { %v1753_v10 = vpop.f32.mrf.mxu0  ;;  %1355 = vadd.xlane.f32.xlu1 %v1354_v9  ;;  %v1557_v9 = vrot.slane %v2037_v62, %v1556_v5 }
 0x7a7   : > { %v1356_v8 = vpop.xlane.xlu1 %1355 }
 0x7a8   : > { %v1358_v14 = vmul.f32 0.03125, %v1356_v8 }
 0x7aa   : > { %v1359_v15 = vsub.f32 %v1353_v6, %v1358_v14  ;;  %v1552_v6 = vrot.slane %v2037_v62, %v1551_v4 }
 0x7ac   : > { %v1360_v11 = vmul.f32 %v1359_v15, %v1359_v15 }
 0x7ae   : > { %v1361_v16 = vsel %vm372_vm1, %v1360_v11, 0.0 }
 0x7af   : > { %1362 = vadd.xlane.f32.xlu0 %v1361_v16 }
 0x838   : > { %v1363_v17 = vpop.xlane.xlu0 %1362 }
 0x839   : > { %v1364_v18 = vmul.f32 0.03125, %v1363_v17 }
 0x83b   : > { %v1365_v19 = vadd.f32 1e-12, %v1364_v18 }
 0x83d   : > { %1821 = vrsqrt.f32 %v1365_v19 }
 0x84a   : > { %v1822_v23 = vpop.eup %1821 }
 0x84b   : > { %v1367_v24 = vmul.f32 %v1822_v23, %v1359_v15 }
 0x84d   : > { %v1372_v26 = vmul.f32 %v1371_v22, %v1367_v24 }
 0x84f   : > { %v1377_v27 = vadd.f32 %v1376_v25, %v1372_v26 }
 0x851   : > { %v1382_v28 = vpack.c.bf16 %v1377_v27, %v1377_v27 }
 0x853   : > { %1759 = vmatmul.mubr.msk.bf16.vlgmr.msra.gmra.mxu1 %vm372_vm1, %v1382_v28 }
 0x913   : > { %v1439_v34 = vpop.f32.mrf.mxu1 }
 0x914   : > { %v1440_v35 = vadd.f32 %v1649_v33, %v1439_v34 }
 0x915   : > { %v1760_v36 = vpop.f32.mrf.mxu1 }
 0x916   : > { %v1445_v37 = vmul.f32 %v1440_v35, %v1440_v35 }
 0x917   : > { %v1442_v38 = vpop.f32.mrf.mxu1 }
 0x918   : > { %v1446_v39 = vmul.f32 %v1445_v37, %v1440_v35 }
 0x919   : > { %v1761_v40 = vpop.f32.mrf.mxu1 }
 0x91a   : > { %v1447_v41 = vmul.f32 0.044715, %v1446_v39 }
 0x91c   : > { %v1448_v42 = vadd.f32 %v1447_v41, %v1440_v35 }
 0x91e   : > { %v1449_v43 = vmul.f32 0.7978846, %v1448_v42 }
 0x920   : > { %1823 = vtanh.f32 %v1449_v43 }
 0x92d   : > { %v1824_v1 = vpop.eup %1823 }
 0x92e   : > { %v1451_v44 = vadd.f32 1.0, %v1824_v1 }
 0x930   : > { %v1452_v45 = vmul.f32 0.5, %v1451_v44 }
 0x932   : > { %v1453_v46 = vmul.f32 %v1452_v45, %v1440_v35 }
 0x934   : > { %v1462_v47 = vpack.c.bf16 %v1453_v46, %v1453_v46 }
 0x936   : > { %1771 = vmatmul.mubr.msk.bf16.vlgmr.msra.gmra.mxu0 %vm1491_vm6, %v1462_v47 }
 0x9f6   : > { %v1529_v50 = vpop.f32.mrf.mxu0 }
 0x9f7   : > { %v1530_v51 = vadd.f32 %v1529_v50, %v1466_v49 }
 0x9f8   : > { %v1772_v52 = vpop.f32.mrf.mxu0 }
 0x9f9   : > { %v1535_v53 = vadd.f32 %v1530_v51, %v1377_v27 }
 0x9fa   : > { %v1532_v54 = vpop.f32.mrf.mxu0 }
 0x9fb   : > { %v1536_v55 = vsel %vm372_vm1, %v1535_v53, 0.0 }
 0x9fc   : > { %1537 = vadd.xlane.f32.xlu1 %v1536_v55  ;;  %v1773_v56 = vpop.f32.mrf.mxu0 }
 0xa85   : > { %v1538_v57 = vpop.xlane.xlu1 %1537 }
 0xa86   : > { %v1539_v58 = vmul.f32 0.03125, %v1538_v57 }
 0xa88   : > { %v1540_v59 = vsub.f32 %v1535_v53, %v1539_v58 }
 0xa8a   : > { %v1541_v60 = vmul.f32 %v1540_v59, %v1540_v59 }
 0xa8c   : > { %v1542_v61 = vsel %vm372_vm1, %v1541_v60, 0.0 }
 0xa8d   : > { %1543 = vadd.xlane.f32.xlu0 %v1542_v61 }
 0xb16   : > { %v1544_v63 = vpop.xlane.xlu0 %1543 }
 0xb17   : > { %v1545_v0 = vmul.f32 0.03125, %v1544_v63 }
 0xb19   : > { %v1546_v2 = vadd.f32 1e-12, %v1545_v0 }
 0xb1b   : > { %1825 = vrsqrt.f32 %v1546_v2 }
 0xb28   : > { %v1826_v7 = vpop.eup %1825 }
 0xb29   : > { %v1548_v10 = vmul.f32 %v1826_v7, %v1540_v59 }
 0xb2b   : > { %v1553_v8 = vmul.f32 %v1552_v6, %v1548_v10 }
 0xb2d   : > { %v1558_v14 = vadd.f32 %v1557_v9, %v1553_v8 }
 0xb2f   : > { %v1559_v15 = vpack.c.bf16 %v1558_v14, %v1558_v14 }
 0xb31   : > { %1561 = vst.msk [vmem:[%s341_s18] sm:$0xf] %vm1560_vm7, %v1559_v15 }
 0xb32 PF: > { %s19_s30 = sadd.s32 1, %s1833_s30  }
 0xb33   : > { %p16_p4 = scmp.ge.s32.totalorder %s19_s30, 4  }
 0xb35   :  { %18 = sbr.rel (!%p16_p4) target bundleno = 1 (0x1), region = 89 }

</bundles_post_ra>
